<compile_context>
chip_gen: v6e
topology: v6e:2x2x1
jax: 0.10.0
libtpu: 0.0.40
codegen_flags: <defaults>
</compile_context>

<pallas_src>
import functools
import math

import jax
import jax.numpy as jnp
from jax.experimental import pallas as pl
from jax.experimental.pallas import tpu as pltpu

_NEG_BIG = -1e30
_POS_BIG = 1e30


# ----------------------- fused scalar-loss reduction kernel -----------------------
# Lane-partial accumulator layout in the (12, B, 128) VMEM scratch:
#   0: sum(seg*reg)    1: sum(seg)    2: sum(reg)       -> dice(seg_output, region_l)
#   3: sum(edge*el)    4: sum(edge)   5: sum(el)        -> dice(edge_output, edge_l)
#   6: sum(pmask*seg)  7: sum(pmask)  (reuse 1)         -> dice(point_mask, seg_output)
#   8: sum(sedge*edge) 9: sum(sedge)  (reuse 4)         -> dice(seg_edge, edge_output)
#  10: BCE partial sum     11: MSE partial sum
# Finalize packs the 6 losses into one lane-dense (1, 128) output (slots 0..5).

def _fused_losses_kernel(seg_ref, reg_ref, edge_ref, edgel_ref, pfeat_ref, pcb_ref,
                         pmask_ref, sedge_ref, out_ref, acc_ref,
                         *, smooth, total, nbatch):
    step = pl.program_id(0)

    @pl.when(step == 0)
    def _init():
        acc_ref[...] = jnp.zeros_like(acc_ref)

    seg = seg_ref[...].astype(jnp.float32)        # (B, S, 128) sublane-dense blocks
    reg = reg_ref[...].astype(jnp.float32)
    edge = edge_ref[...].astype(jnp.float32)
    edgel = edgel_ref[...].astype(jnp.float32)
    pfeat = pfeat_ref[...].astype(jnp.float32)
    pcb = pcb_ref[...].astype(jnp.float32)
    pmask = pmask_ref[...].astype(jnp.float32)
    sedge = sedge_ref[...].astype(jnp.float32)

    def accum(k, v):
        # fold only the sublane axis each step (cheap vreg adds); the single cross-lane
        # reduction is deferred to the finalize branch.
        acc_ref[k] += jnp.sum(v, axis=1)          # (B, 128) lane partials

    # BCE terms (PyTorch nn.BCELoss clamps the log terms at -100); log/exp live on the EUP
    # slot and hide under the dice VALU work.
    log_p = jnp.maximum(jnp.log(edge), -100.0)
    log_1mp = jnp.maximum(jnp.log(1.0 - edge), -100.0)
    bce = -(edgel * log_p + (1.0 - edgel) * log_1mp)
    msd = pfeat - pcb

    accum(0, seg * reg)
    accum(1, seg)
    accum(2, reg)
    accum(3, edge * edgel)
    accum(4, edge)
    accum(5, edgel)
    accum(6, pmask * seg)
    accum(7, pmask)
    accum(8, sedge * edge)
    accum(9, sedge)
    accum(10, bce)
    accum(11, msd * msd)

    @pl.when(step == pl.num_programs(0) - 1)
    def _finalize():
        def tot(k):                                # one cross-lane reduce per slot, once
            return jnp.sum(acc_ref[k], axis=-1, keepdims=True)      # (B, 1)

        s = [tot(k) for k in range(12)]

        def dice(i_int, i_p, i_t):
            score = (2.0 * s[i_int] + smooth) / (s[i_p] + s[i_t] + smooth)
            return 1.0 - jnp.sum(score) / nbatch

        losses = (dice(0, 1, 2),                   # dice(seg_output, region_l)
                  dice(3, 4, 5),                   # dice(edge_output, edge_l)
                  jnp.sum(s[10]) / total,          # BCE(edge_output, edge_l)
                  jnp.sum(s[11]) / total,          # MSE(point_feat, point_cb)
                  dice(6, 7, 1),                   # dice(point_mask, seg_output)
                  dice(8, 9, 4))                   # dice(seg_edge, edge_output)

        lane = jax.lax.broadcasted_iota(jnp.int32, (1, 128), 1)
        packed = jnp.zeros((1, 128), jnp.float32)
        for idx, v in enumerate(losses):
            packed = packed + jnp.where(lane == idx, v, 0.0)
        out_ref[...] = packed                      # single lane-dense store


def _sublane_block(s_total, batch):
    """Sublane depth so each (B, S, 128) f32 block is ~<= 0.5 MiB and a multiple of 8."""
    cap = max(8, (((512 * 1024) // (batch * 128 * 4)) // 8) * 8)
    if s_total <= cap:
        return max(8, ((s_total + 7) // 8) * 8)
    return cap


def fused_supervised_losses(seg_output, region_l, edge_output, edge_l,
                            point_feat, point_cb, point_mask, seg_edge, smooth=1.0):
    """One tiled pallas_call -> (dice_region, dice_edge, bce_edge, mse_point,
                                 dice_pointmask_vs_seg, dice_segedge_vs_edge)."""
    B = seg_output.shape[0]
    flats = [x.reshape(B, -1) for x in (seg_output, region_l, edge_output, edge_l,
                                        point_feat, point_cb, point_mask, seg_edge)]
    M = flats[0].shape[1]
    s_total = pl.cdiv(M, 128)
    s_blk = _sublane_block(s_total, B)
    s_pad = pl.cdiv(s_total, s_blk) * s_blk
    m_pad = s_pad * 128

    def shape3d(x):
        if m_pad != M:
            x = jnp.pad(x, ((0, 0), (0, m_pad - M)))   # zero padding is inert for every term
        return x.reshape(B, s_pad, 128)

    ins = [shape3d(x) for x in flats]
    grid = (s_pad // s_blk,)

    out = pl.pallas_call(
        functools.partial(_fused_losses_kernel, smooth=float(smooth),
                          total=float(B * M), nbatch=float(B)),
        grid=grid,
        in_specs=[pl.BlockSpec((B, s_blk, 128), lambda m: (0, m, 0)) for _ in range(8)],
        out_specs=pl.BlockSpec((1, 128), lambda m: (0, 0)),
        out_shape=jax.ShapeDtypeStruct((1, 128), jnp.float32),
        scratch_shapes=[pltpu.VMEM((12, B, 128), jnp.float32)],
        compiler_params=pltpu.CompilerParams(
            dimension_semantics=("arbitrary",),
            vmem_limit_bytes=48 * 1024 * 1024),
    )(*ins)
    # TODO(synk): on v7x (2 TensorCores) split the reduction into a leading "parallel" chunk
    # axis with per-chunk partial sums combined in plain JAX to use both cores.
    return out[0, 0], out[0, 1], out[0, 2], out[0, 3], out[0, 4], out[0, 5]


# --------------------------- morphological edge detector ---------------------------

def _shift_fill(x, off, axis, fill):
    """result[..., i, ...] = x[..., i+off, ...] along `axis`; `fill` outside the image.
    XLU roll + iota border select (no slice/concatenate VMEM copies)."""
    if off == 0:
        return x
    n = x.shape[axis]
    rolled = pltpu.roll(x, shift=(-off) % n, axis=axis)
    idx = jax.lax.broadcasted_iota(jnp.int32, x.shape, axis)
    if off > 0:
        valid = idx < (n - off)
    else:
        valid = idx >= (-off)
    return jnp.where(valid, rolled, fill)


def _separable_pool(x, k, op, fill):
    """k x k stride-1 min/max pool with implicit +/-inf borders (separable: W then H)."""
    if k <= 1:
        return x
    p = k // 2
    row = x
    for off in range(-p, p + 1):
        if off != 0:
            row = op(row, _shift_fill(x, off, 2, fill))
    out = row
    for off in range(-p, p + 1):
        if off != 0:
            out = op(out, _shift_fill(row, off, 1, fill))
    return out


def _morph_edge_kernel(x_ref, o_ref, *, max_k, min_k):
    x = x_ref[...].astype(jnp.float32)                        # (K, H, W) image batch
    dil = _separable_pool(x, max_k, jnp.maximum, _NEG_BIG)    # identity when max_k == 1
    ero = _separable_pool(x, min_k, jnp.minimum, _POS_BIG)
    o_ref[...] = dil - ero


def region_edge_detector(x, max_k, min_k):
    # TODO(synk): region_edge_detector source not provided; implemented as the standard
    # morphological gradient  maxpool_{max_k}(x) - minpool_{min_k}(x)  (stride 1, same size).
    B, C, H, W = x.shape
    n_img = B * C
    x3 = x.reshape(n_img, H, W)
    k_cap = max(1, (1 << 20) // (H * W * 4))      # keep a block at ~<= 1 MiB
    k_blk = 1
    for cand in range(min(n_img, k_cap), 0, -1):
        if n_img % cand == 0:
            k_blk = cand
            break
    out = pl.pallas_call(
        functools.partial(_morph_edge_kernel, max_k=max_k, min_k=min_k),
        grid=(n_img // k_blk,),
        in_specs=[pl.BlockSpec((k_blk, H, W), lambda b: (b, 0, 0))],
        out_specs=pl.BlockSpec((k_blk, H, W), lambda b: (b, 0, 0)),
        out_shape=jax.ShapeDtypeStruct((n_img, H, W), jnp.float32),
        compiler_params=pltpu.CompilerParams(dimension_semantics=("parallel",)),
    )(x3)
    # TODO(synk): for multi-megapixel images on v7x (64 MiB VMEM) tile along H with a
    # (min_k//2)-row halo instead of whole-image blocks.
    return out.reshape(B, C, H, W)


# ------------------- contrastive loss (VMEM-resident keys, row grid) -------------------

def _contr_kernel(q_ref, kT_ref, anc_ref, neg_ref, pos_ref, o_ref, *, inv_temp, n_chunks):
    q = q_ref[...]                                   # (TR, C) bf16 query rows
    pos = pos_ref[...]                               # (TR, 1) f32 positive logit

    def body(c, carry):
        m, l = carry
        k = kT_ref[c]                                # (C, COL) bf16, VMEM-resident keys
        neg = neg_ref[c]                             # (1, COL) f32 negative-mask chunk
        sim = jax.lax.dot_general(q, k, (((1,), (0,)), ((), ())),
                                  preferred_element_type=jnp.float32) * inv_temp
        sim = jnp.where(neg > 0.0, sim, _NEG_BIG)    # keep negative-mask columns only
        m_new = jnp.maximum(m, jnp.max(sim, axis=1, keepdims=True))
        alpha = jnp.exp(m - m_new)
        l_new = alpha * l + jnp.sum(jnp.exp(sim - m_new), axis=1, keepdims=True)
        return m_new, l_new

    m, l = jax.lax.fori_loop(0, n_chunks, body, (pos, jnp.zeros_like(pos)))
    p = jnp.exp(pos - m)
    o_ref[...] = anc_ref[...] * (p / (p + l))        # anchor-masked per-row probability


def contrastive_loss(feat, anchor_mask, pos_mask, neg_mask, temp=0.1,
                     row_tile=256, col_chunk=512):
    # feat: (B, C, Hm, Wm); masks: (B, 1, Hm, Wm) bool.
    # TODO(synk): sampleFeat's random negative subsampling (max_k=15000) is a no-op below
    # 15k pixels (only a permutation), and the sampled positive is dead code in the reference
    # (overwritten by pos_all.mean(0)); both are therefore omitted.
    B, C, H, W = feat.shape
    f = jnp.transpose(feat, (0, 2, 3, 1)).reshape(-1, C).astype(jnp.float32)
    am = anchor_mask.reshape(-1).astype(jnp.float32)
    pm = pos_mask.reshape(-1).astype(jnp.float32)
    nm = neg_mask.reshape(-1).astype(jnp.float32)
    N = f.shape[0]

    # pos_feat / per-pixel positive logit hoisted out of the kernel (O(N*C); an M=1 matmul
    # inside the tiled loop would waste the MXU).
    pos_cnt = jnp.maximum(jnp.sum(pm), 1.0)
    pos_feat = jnp.sum(f * pm[:, None], axis=0) / pos_cnt            # (C,)
    pos_logit = (f @ pos_feat) / float(temp)                         # (N,)
    anc_cnt = jnp.maximum(jnp.sum(am), 1.0)

    # Pad the pixel axis; padded rows/cols have anchor = neg = 0 -> inert.
    unit = max(row_tile, col_chunk)
    n_pad = pl.cdiv(N, unit) * unit
    pad = n_pad - N
    f_pad = jnp.pad(f, ((0, pad), (0, 0)))
    q_bf = f_pad.astype(jnp.bfloat16)                                # (n_pad, C)
    n_chunks = n_pad // col_chunk
    # keys pre-transposed & chunked: (n_chunks, C, COL); whole array stays resident in VMEM.
    kT_bf = jnp.transpose(q_bf.reshape(n_chunks, col_chunk, C), (0, 2, 1))
    neg3 = jnp.pad(nm, (0, pad)).reshape(n_chunks, 1, col_chunk)
    anc = jnp.pad(am, (0, pad)).reshape(n_pad, 1)
    posl = jnp.pad(pos_logit, (0, pad)).reshape(n_pad, 1)

    out = pl.pallas_call(
        functools.partial(_contr_kernel, inv_temp=1.0 / float(temp), n_chunks=n_chunks),
        grid=(n_pad // row_tile,),
        in_specs=[pl.BlockSpec((row_tile, C), lambda i: (i, 0)),                  # queries
                  pl.BlockSpec((n_chunks, C, col_chunk), lambda i: (0, 0, 0)),    # resident keys
                  pl.BlockSpec((row_tile, 1), lambda i: (i, 0)),                  # anchor mask
                  pl.BlockSpec((n_chunks, 1, col_chunk), lambda i: (0, 0, 0)),    # resident neg mask
                  pl.BlockSpec((row_tile, 1), lambda i: (i, 0))],                 # positive logit
        out_specs=pl.BlockSpec((row_tile, 1), lambda i: (i, 0)),
        out_shape=jax.ShapeDtypeStruct((n_pad, 1), jnp.float32),
        compiler_params=pltpu.CompilerParams(
            dimension_semantics=("parallel",),
            vmem_limit_bytes=48 * 1024 * 1024),
    )(q_bf, kT_bf, anc, neg3, posl)
    # TODO(synk): for very large N on v7x verify n_pad*C bf16 keys still fit the 64 MiB VMEM;
    # fall back to a second "arbitrary" key-tile grid axis if not.
    return jnp.sum(out) / anc_cnt


# ------------------------------- plain-JAX glue -------------------------------

def _interp_matrix(out_size, in_size):
    """Interpolation weights matching F.interpolate(mode='bilinear', align_corners=False)."""
    scale = in_size / out_size
    src = (jnp.arange(out_size, dtype=jnp.float32) + 0.5) * scale - 0.5
    src = jnp.maximum(src, 0.0)
    i0 = jnp.minimum(jnp.floor(src).astype(jnp.int32), in_size - 1)
    i1 = jnp.minimum(i0 + 1, in_size - 1)
    frac = src - i0.astype(jnp.float32)
    return (jax.nn.one_hot(i0, in_size, dtype=jnp.float32) * (1.0 - frac)[:, None]
            + jax.nn.one_hot(i1, in_size, dtype=jnp.float32) * frac[:, None])     # (out, in)


def bilinear_resize_nchw(x, out_hw):
    """Bilinear resize as two small dense matmuls (MXU-friendly, no gathers)."""
    oh, ow = out_hw
    _, _, H, W = x.shape
    wy = _interp_matrix(oh, H)                       # (oh, H)
    wx = _interp_matrix(ow, W)                       # (ow, W)
    y = jnp.einsum('oh,bchw->bcow', wy, x)
    return jnp.einsum('bcow,pw->bcop', y, wx)


def gaussian_ramp(w, epoch, end_epoch, start_epoch=0):
    # TODO(synk): GaussianRamp source not provided; standard Gaussian ramp-up used.
    if epoch is None:
        return w
    length = max(end_epoch - start_epoch, 1)
    t = min(max((epoch - start_epoch) / length, 0.0), 1.0)
    return w * math.exp(-5.0 * (1.0 - t) ** 2)


class SupervisedLoss:
    def __init__(self, conf):
        self.input_size = conf["input_size"]
        self.seg_mid_size = (self.input_size[0] // 8, self.input_size[1] // 8)
        self.edge_kernel = conf["edge_kernel"]
        self.edge_w = conf["edge_w"]
        self.point_w = conf["point_w"]
        self.point_mse_w = conf["point_mse_w"]
        self.edge_con_w = conf["edge_con_w"]
        self.point_con_w = conf["point_con_w"]
        self.edge_contr_w = conf["edge_contr_w"]
        self.point_contr_w = conf["point_contr_w"]
        self.area_con_w = conf["area_con_w"]
        self.semi_epoch = conf["semi_epoch"]

    def __call__(self, seg_output, edge_output, point_feat, proj_feat, point_mask,
                 region_l=None, edge_l=None, point_cb=None, epoch=None):
        loss_l = 0.0
        seg_edge = region_edge_detector(seg_output, max_k=1, min_k=self.edge_kernel)

        point_l = point_cb
        (region_loss, edge_dc_loss, edge_ce_loss, point_loss,
         mask_ras_l_reg, edge_l_reg) = fused_supervised_losses(
            seg_output, region_l, edge_output, edge_l,
            point_feat, point_l, point_mask, seg_edge)
        region_mid_loss = 0.0

        edge_con_w = gaussian_ramp(self.edge_con_w, epoch, 4 * self.semi_epoch)
        point_con_w = gaussian_ramp(self.point_con_w, epoch, 4 * self.semi_epoch)
        loss_l += (region_loss + 0.1 * region_mid_loss
                   + self.edge_w * (edge_dc_loss + edge_ce_loss)
                   + self.point_w * point_loss
                   + edge_con_w * edge_l_reg
                   + point_con_w * mask_ras_l_reg)
        loss_list = [region_loss, region_mid_loss, edge_dc_loss, edge_ce_loss,
                     point_loss, edge_l_reg, mask_ras_l_reg]

        # --- mask construction (torch.no_grad block) ---
        mid = self.seg_mid_size
        edge_output_mask = bilinear_resize_nchw(edge_output, mid) > 0.5
        seg_edge_mask = bilinear_resize_nchw(seg_edge, mid) > 0.5
        edge_l_mask = bilinear_resize_nchw(edge_l, mid) != 0.0
        edge_pos_mask = edge_l_mask & (edge_output_mask & seg_edge_mask)
        edge_anchor_mask = edge_l_mask & (~edge_pos_mask)
        edge_neg_mask = edge_output_mask & (seg_edge_mask & (~edge_pos_mask))

        contr = contrastive_loss(proj_feat, edge_anchor_mask, edge_pos_mask,
                                 edge_neg_mask, temp=0.1)
        valid = (jnp.any(edge_pos_mask) & jnp.any(edge_anchor_mask)
                 & jnp.any(edge_neg_mask))
        edge_l_contr = jnp.where(valid, contr, jnp.float32(0.0))

        edge_contr_w = gaussian_ramp(self.edge_contr_w, epoch, 60 + 20, start_epoch=60)
        loss_l = loss_l + edge_contr_w * edge_l_contr
        loss_list.append(edge_l_contr)
        return loss_l, loss_list


# ---------------------------------- main --------------------------------------

if __name__ == "__main__":
    key = jax.random.PRNGKey(0)
    ks = jax.random.split(key, 8)

    B, H, W = 2, 32, 32
    C_proj = 32
    conf = dict(input_size=(H, W), edge_kernel=3, edge_w=1.0, point_w=1.0,
                point_mse_w=1.0, edge_con_w=0.5, point_con_w=0.5,
                edge_contr_w=0.1, point_contr_w=0.1, area_con_w=0.1, semi_epoch=10)

    seg_output = jax.nn.sigmoid(jax.random.normal(ks[0], (B, 1, H, W), jnp.float32))
    edge_output = jax.nn.sigmoid(jax.random.normal(ks[1], (B, 1, H, W), jnp.float32))
    point_feat = jax.random.normal(ks[2], (B, 1, H, W), jnp.float32)
    proj_feat = 0.1 * jax.random.normal(ks[3], (B, C_proj, H // 8, W // 8), jnp.float32)
    point_mask = jax.nn.sigmoid(jax.random.normal(ks[4], (B, 1, H, W), jnp.float32))
    region_l = (jax.random.uniform(ks[5], (B, 1, H, W)) > 0.5).astype(jnp.float32)
    edge_l = (jax.random.uniform(ks[6], (B, 1, H, W)) > 0.7).astype(jnp.float32)
    point_cb = jax.random.normal(ks[7], (B, 1, H, W), jnp.float32)
    epoch = 65

    criterion = SupervisedLoss(conf)
    loss_l, loss_list = criterion(seg_output, edge_output, point_feat, proj_feat,
                                  point_mask, region_l, edge_l, point_cb, epoch)
    jax.block_until_ready(loss_l)
    print("KERNEL_OK")
</pallas_src>

<mosaic_0001>
module attributes {stable_mosaic.version = 11 : i64} {
  func.func @_morph_edge_kernel(%arg0: i32, %arg1: memref<2x32x32xf32, #tpu.memory_space<vmem>>, %arg2: memref<2x32x32xf32, #tpu.memory_space<vmem>>) attributes {dimension_semantics = [#tpu.dimension_semantics<parallel>], iteration_bounds = array<i64: 1>, scalar_prefetch = 0 : i64, scratch_operands = 0 : i64, tpu.core_type = #tpu.core_type<tc>, window_params = [{transform_indices = @transform_0, window_bounds = array<i64: 2, 32, 32>}, {transform_indices = @transform_1, window_bounds = array<i64: 2, 32, 32>}]} {
    %c0 = arith.constant 0 : index
    %c0_0 = arith.constant 0 : index
    %c0_1 = arith.constant 0 : index
    %0 = vector.load %arg1[%c0, %c0_0, %c0_1] : memref<2x32x32xf32, #tpu.memory_space<vmem>>, vector<2x32x32xf32>
    %c1_i32 = arith.constant 1 : i32
    %1 = tpu.dynamic_rotate %0 by %c1_i32 dim 2 : vector<2x32x32xf32>, i32 -> vector<2x32x32xf32>
    %2 = tpu.iota {dimensions = array<i32: 2>} : vector<2x32x32xi32>
    %c1_i32_2 = arith.constant 1 : i32
    %3 = vector.broadcast %c1_i32_2 : i32 to vector<2x32x32xi32>
    %4 = arith.cmpi sge, %2, %3 : vector<2x32x32xi32>
    %cst = arith.constant 1.000000e+30 : f32
    %5 = vector.broadcast %cst : f32 to vector<2x32x32xf32>
    %6 = arith.select %4, %1, %5 : vector<2x32x32xi1>, vector<2x32x32xf32>
    %7 = arith.minimumf %0, %6 : vector<2x32x32xf32>
    %c31_i32 = arith.constant 31 : i32
    %8 = tpu.dynamic_rotate %0 by %c31_i32 dim 2 : vector<2x32x32xf32>, i32 -> vector<2x32x32xf32>
    %9 = tpu.iota {dimensions = array<i32: 2>} : vector<2x32x32xi32>
    %c31_i32_3 = arith.constant 31 : i32
    %10 = vector.broadcast %c31_i32_3 : i32 to vector<2x32x32xi32>
    %11 = arith.cmpi slt, %9, %10 : vector<2x32x32xi32>
    %cst_4 = arith.constant 1.000000e+30 : f32
    %12 = vector.broadcast %cst_4 : f32 to vector<2x32x32xf32>
    %13 = arith.select %11, %8, %12 : vector<2x32x32xi1>, vector<2x32x32xf32>
    %14 = arith.minimumf %7, %13 : vector<2x32x32xf32>
    %c1_i32_5 = arith.constant 1 : i32
    %15 = tpu.dynamic_rotate %14 by %c1_i32_5 dim 1 : vector<2x32x32xf32>, i32 -> vector<2x32x32xf32>
    %16 = tpu.iota {dimensions = array<i32: 1>} : vector<2x32x32xi32>
    %c1_i32_6 = arith.constant 1 : i32
    %17 = vector.broadcast %c1_i32_6 : i32 to vector<2x32x32xi32>
    %18 = arith.cmpi sge, %16, %17 : vector<2x32x32xi32>
    %cst_7 = arith.constant 1.000000e+30 : f32
    %19 = vector.broadcast %cst_7 : f32 to vector<2x32x32xf32>
    %20 = arith.select %18, %15, %19 : vector<2x32x32xi1>, vector<2x32x32xf32>
    %21 = arith.minimumf %14, %20 : vector<2x32x32xf32>
    %c31_i32_8 = arith.constant 31 : i32
    %22 = tpu.dynamic_rotate %14 by %c31_i32_8 dim 1 : vector<2x32x32xf32>, i32 -> vector<2x32x32xf32>
    %23 = tpu.iota {dimensions = array<i32: 1>} : vector<2x32x32xi32>
    %c31_i32_9 = arith.constant 31 : i32
    %24 = vector.broadcast %c31_i32_9 : i32 to vector<2x32x32xi32>
    %25 = arith.cmpi slt, %23, %24 : vector<2x32x32xi32>
    %cst_10 = arith.constant 1.000000e+30 : f32
    %26 = vector.broadcast %cst_10 : f32 to vector<2x32x32xf32>
    %27 = arith.select %25, %22, %26 : vector<2x32x32xi1>, vector<2x32x32xf32>
    %28 = arith.minimumf %21, %27 : vector<2x32x32xf32>
    %29 = arith.subf %0, %28 : vector<2x32x32xf32>
    %c0_11 = arith.constant 0 : index
    %c0_12 = arith.constant 0 : index
    %c0_13 = arith.constant 0 : index
    %30 = vector.load %arg2[%c0_11, %c0_12, %c0_13] : memref<2x32x32xf32, #tpu.memory_space<vmem>>, vector<2x32x32xf32>
    tpu.vector_store %arg2[%c0_11, %c0_12, %c0_13], %29 {strides = array<i32>} : memref<2x32x32xf32, #tpu.memory_space<vmem>>, vector<2x32x32xf32>,
    return
  }
  func.func @transform_0(%arg0: i32) -> (i32, i32, i32) {
    %c0_i32 = arith.constant 0 : i32
    %c0_i32_0 = arith.constant 0 : i32
    %c0_i32_1 = arith.constant 0 : i32
    return %arg0, %c0_i32, %c0_i32_0 : i32, i32, i32
  }
  func.func @transform_1(%arg0: i32) -> (i32, i32, i32) {
    %c0_i32 = arith.constant 0 : i32
    %c0_i32_0 = arith.constant 0 : i32
    %c0_i32_1 = arith.constant 0 : i32
    return %arg0, %c0_i32, %c0_i32_0 : i32, i32, i32
  }
}

</mosaic_0001>

<bundles_post_ra>
// kernel: tpu_custom_call.1
= control target key start
LH: loop header
LB: loop body
LE: loop exit
PB: predicated region body
PF: predicated region fallthrough
CT: control target
= control target key end

     0   :  { %6 = vsyncpa [#allocation3], 0  ;;  %s561_s0 = inlined_call_operand.hbm [shape: f32[2,32,32], index: 0, kind: input, shape index: {}]   ;;  %s562_s1 = inlined_call_operand.hbm [shape: f32[2,32,32], index: 1, kind: output, shape index: {}]  }
   0x1   :  { %7 = vsyncpa [#allocation4], 0  ;;  %s336_s6 = smov [#allocation2]  }
   0x2   :  { %s13_s7 = sshll.u32 %s336_s6, 4  ;;  %s14_s7 = int_to_ptr.vmem [resolvable:$true] %s13_s7 }
   0x3   :  { %s300_s8 = scalar_lea.vmem %s14_s7, 1024  ;;  %p305_p1 = scmp.lt.s32.totalorder %s14_s7, %s14_s7 }
   0x4   :  { %p301_p0 = scmp.ne.s32.totalorder %s14_s7, %s300_s8  ;;  %p306_p2 = scmp.lt.s32.totalorder %s300_s8, %s300_s8 }
   0x6   :  { %p307_p3 = por %p306_p2, %p305_p1 }
   0x8   :  { %p308_p4 = pnand %p307_p3, %p301_p0 }
   0xa   :  { %311 = shalt.err (!%p308_p4)
}
   0xb   :  { %s337_s9 = smov 128   ;;  %s338_s10 = smov 8  }
   0xc   :  { %19 = dma.hbm_to_vmem [thread:$0]  %s561_s0, 1024, %s14_s7, [#allocation3], %s337_s9, %s337_s9, %s338_s10  }
   0xd   :  { %332 = dma.done.wait [#allocation3], 1024  }
   0xe   :  { %333 = vsyncadd [#allocation3], 4294966272  ;;  %v359_v0 = vld [vmem:[#allocation2] sm:$0xff]  ;;  %s339_s13 = smov 32   ;;  %v367_v2 = vld [vmem:[#allocation2 + $0x18] sm:$0xff]  ;;  %vm31_vm0 = vcmask 1047808   ;;  %v80_v41 = vlaneseq }
   0xf   :  { %v361_v1 = vld [vmem:[#allocation2 + $0x20] sm:$0xff]  ;;  %32 = vrot.lane.b32.xlu0 %v359_v0, %s339_s13  ;;  %v369_v3 = vld [vmem:[#allocation2 + $0x38] sm:$0xff]  ;;  %v375_v4 = vld [vmem:[#allocation2 + $0x8] sm:$0xff]  ;;  %s340_s0 = smov 97   ;;  %s341_s14 = smov 127   ;;  %vm259_vm7 = vcmask 261120  }
  0x10   :  { %44 = vrot.lane.b32.xlu1 %v361_v1, %s339_s13  ;;  %v377_v5 = vld [vmem:[#allocation2 + $0x10] sm:$0xff]  ;;  %v383_v6 = vld [vmem:[#allocation2 + $0x28] sm:$0xff]  ;;  %v431_v44 = vand.u32 127, %v80_v41  ;;  %v437_v50 = vshrl.u32 %v80_v41, 7  ;;  %s342_s15 = smov [#allocation5]  }
  0x11   :  { %v385_v7 = vld [vmem:[#allocation2 + $0x30] sm:$0xff]  ;;  %s273_s16 = sshll.u32 %s342_s15, 4  ;;  %s274_s16 = int_to_ptr.vmem [resolvable:$true] %s273_s16 }
  0x12   :  { %vm82_vm1 = vcmp.ge.s32.totalorder %v431_v44, 1  ;;  %vm131_vm2 = vcmp.lt.s32.totalorder %v431_v44, 31  ;;  %v447_v57 = vadd.s32 24, %v437_v50  ;;  %vm182_vm3 = vcmp.lt.s32.totalorder %v437_v50, 1  ;;  %s312_s17 = scalar_lea.vmem %s274_s16, 1024  ;;  %p317_p6 = scmp.lt.s32.totalorder %s274_s16, %s274_s16 }
  0x13   :  { %41 = vrot.lane.b32.xlu0 %v367_v2, %s339_s13  ;;  %vm194_vm4 = vcmp.ge.s32.totalorder %v437_v50, 1  ;;  %vm222_vm5 = vcmp.lt.s32.totalorder %v437_v50, 7  ;;  %p313_p5 = scmp.ne.s32.totalorder %s274_s16, %s312_s17  ;;  %p318_p7 = scmp.lt.s32.totalorder %s312_s17, %s312_s17 }
  0x14   :  { %53 = vrot.lane.b32.xlu1 %v369_v3, %s339_s13  ;;  %vm234_vm6 = vcmp.lt.s32.totalorder %v447_v57, 31 }
  0x15   :  { %p319_p8 = por %p318_p7, %p317_p6 }
  0x17   :  { %35 = vrot.lane.b32.xlu0 %v375_v4, %s339_s13  ;;  %p320_p9 = pnand %p319_p8, %p313_p5 }
  0x18   :  { %38 = vrot.lane.b32.xlu1 %v377_v5, %s339_s13 }
  0x1b   :  { %47 = vrot.lane.b32.xlu0 %v383_v6, %s339_s13 }
  0x1c   :  { %50 = vrot.lane.b32.xlu1 %v385_v7, %s339_s13 }
  0x81   :  { %v33_v8 = vpop.permute.xlu0 %32 }
  0x82   :  { %v45_v9 = vpop.permute.xlu1 %44  ;;  %v34_v10 = vsel %vm31_vm0, %v33_v8, %v359_v0 }
  0x83   :  { %56 = vrot.lane.b32.xlu0 %v34_v10, %s339_s13  ;;  %v46_v11 = vsel %vm31_vm0, %v45_v9, %v361_v1 }
  0x85   :  { %v42_v12 = vpop.permute.xlu0 %41 }
  0x86   :  { %v54_v13 = vpop.permute.xlu1 %53  ;;  %v43_v14 = vsel %vm31_vm0, %v42_v12, %v367_v2 }
  0x87   :  { %64 = vrot.lane.b32.xlu0 %v46_v11, %s339_s13  ;;  %62 = vrot.lane.b32.xlu1 %v43_v14, %s339_s13  ;;  %v55_v15 = vsel %vm31_vm0, %v54_v13, %v369_v3 }
  0x89   :  { %v36_v16 = vpop.permute.xlu0 %35 }
  0x8a   :  { %v39_v17 = vpop.permute.xlu1 %38  ;;  %v37_v18 = vsel %vm31_vm0, %v36_v16, %v375_v4 }
  0x8b   :  { %70 = vrot.lane.b32.xlu1 %v55_v15, %s339_s13  ;;  %58 = vrot.lane.b32.xlu0 %v37_v18, %s339_s13  ;;  %v40_v19 = vsel %vm31_vm0, %v39_v17, %v377_v5 }
  0x8d   :  { %v48_v20 = vpop.permute.xlu0 %47 }
  0x8e   :  { %v51_v21 = vpop.permute.xlu1 %50  ;;  %v49_v22 = vsel %vm31_vm0, %v48_v20, %v383_v6 }
  0x8f   :  { %60 = vrot.lane.b32.xlu1 %v40_v19, %s339_s13  ;;  %66 = vrot.lane.b32.xlu0 %v49_v22, %s339_s13  ;;  %v52_v23 = vsel %vm31_vm0, %v51_v21, %v385_v7 }
  0x93   :  { %68 = vrot.lane.b32.xlu1 %v52_v23, %s339_s13 }
  0xf5   :  { %v57_v24 = vpop.permute.xlu0 %56 }
  0xf6   :  { %v72_v25 = vsel %vm31_vm0, %v57_v24, %v359_v0 }
  0xf7   :  { %91 = vrot.lane.b32.xlu0 %v72_v25, %s340_s0 }
  0xf9   :  { %v63_v26 = vpop.permute.xlu1 %62  ;;  %v65_v27 = vpop.permute.xlu0 %64 }
  0xfa   :  { %v75_v28 = vsel %vm31_vm0, %v63_v26, %v367_v2  ;;  %v76_v29 = vsel %vm31_vm0, %v65_v27, %v361_v1 }
  0xfb   :  { %97 = vrot.lane.b32.xlu1 %v75_v28, %s340_s0  ;;  %99 = vrot.lane.b32.xlu0 %v76_v29, %s340_s0 }
  0xfd   :  { %v71_v30 = vpop.permute.xlu1 %70  ;;  %v59_v31 = vpop.permute.xlu0 %58 }
  0xfe   :  { %v79_v32 = vsel %vm31_vm0, %v71_v30, %v369_v3  ;;  %v73_v33 = vsel %vm31_vm0, %v59_v31, %v375_v4 }
  0xff   :  { %105 = vrot.lane.b32.xlu1 %v79_v32, %s340_s0  ;;  %93 = vrot.lane.b32.xlu0 %v73_v33, %s340_s0 }
 0x101   :  { %v61_v34 = vpop.permute.xlu1 %60  ;;  %v67_v35 = vpop.permute.xlu0 %66 }
 0x102   :  { %v74_v36 = vsel %vm31_vm0, %v61_v34, %v377_v5  ;;  %v77_v37 = vsel %vm31_vm0, %v67_v35, %v383_v6 }
 0x103   :  { %95 = vrot.lane.b32.xlu1 %v74_v36, %s340_s0  ;;  %101 = vrot.lane.b32.xlu0 %v77_v37, %s340_s0 }
 0x105   :  { %v69_v38 = vpop.permute.xlu1 %68 }
 0x106   :  { %v78_v39 = vsel %vm31_vm0, %v69_v38, %v385_v7 }
 0x107   :  { %103 = vrot.lane.b32.xlu1 %v78_v39, %s340_s0  ;;  %132 = vrot.lane.b32.xlu0 %v72_v25, %s341_s14 }
 0x10b   :  { %138 = vrot.lane.b32.xlu1 %v75_v28, %s341_s14  ;;  %140 = vrot.lane.b32.xlu0 %v76_v29, %s341_s14 }
 0x10f   :  { %146 = vrot.lane.b32.xlu1 %v79_v32, %s341_s14  ;;  %134 = vrot.lane.b32.xlu0 %v73_v33, %s341_s14 }
 0x113   :  { %136 = vrot.lane.b32.xlu1 %v74_v36, %s341_s14  ;;  %142 = vrot.lane.b32.xlu0 %v77_v37, %s341_s14 }
 0x117   :  { %144 = vrot.lane.b32.xlu1 %v78_v39, %s341_s14 }
 0x169   :  { %v92_v40 = vpop.permute.xlu0 %91 }
 0x16a   :  { %v115_v49 = vsel %vm82_vm1, %v92_v40, 1e+30 }
 0x16b   :  { %v123_v55 = vmin.f32 %v359_v0, %v115_v49 }
 0x16d   :  { %v98_v42 = vpop.permute.xlu1 %97  ;;  %v100_v43 = vpop.permute.xlu0 %99 }
 0x16e   :  { %v118_v53 = vsel %vm82_vm1, %v98_v42, 1e+30  ;;  %v119_v56 = vsel %vm82_vm1, %v100_v43, 1e+30 }
 0x16f   :  { %v126_v58 = vmin.f32 %v367_v2, %v118_v53  ;;  %v127_v10 = vmin.f32 %v361_v1, %v119_v56 }
 0x171   :  { %v106_v45 = vpop.permute.xlu1 %105  ;;  %v94_v46 = vpop.permute.xlu0 %93 }
 0x172   :  { %v122_v59 = vsel %vm82_vm1, %v106_v45, 1e+30  ;;  %v116_v60 = vsel %vm82_vm1, %v94_v46, 1e+30 }
 0x173   :  { %v130_v12 = vmin.f32 %v369_v3, %v122_v59  ;;  %v124_v13 = vmin.f32 %v375_v4, %v116_v60 }
 0x175   :  { %v96_v47 = vpop.permute.xlu1 %95  ;;  %v102_v48 = vpop.permute.xlu0 %101 }
 0x176   :  { %v117_v14 = vsel %vm82_vm1, %v96_v47, 1e+30  ;;  %v120_v23 = vsel %vm82_vm1, %v102_v48, 1e+30 }
 0x177   :  { %v125_v27 = vmin.f32 %v377_v5, %v117_v14  ;;  %v128_v37 = vmin.f32 %v383_v6, %v120_v23 }
 0x179   :  { %v104_v51 = vpop.permute.xlu1 %103  ;;  %v133_v52 = vpop.permute.xlu0 %132 }
 0x17a   :  { %v156_v54 = vsel %vm131_vm2, %v133_v52, 1e+30  ;;  %v121_v28 = vsel %vm82_vm1, %v104_v51, 1e+30 }
 0x17b   :  { %v164_v61 = vmin.f32 %v123_v55, %v156_v54  ;;  %v129_v46 = vmin.f32 %v385_v7, %v121_v28 }
 0x17d   :  { %v139_v62 = vpop.permute.xlu1 %138  ;;  %v141_v63 = vpop.permute.xlu0 %140  ;;  %v172_v15 = vrot.slane %v164_v61, 7  ;;  %v214_v29 = vrot.slane %v164_v61, 1 }
 0x17e   :  { %v159_v8 = vsel %vm131_vm2, %v139_v62, 1e+30  ;;  %v160_v9 = vsel %vm131_vm2, %v141_v63, 1e+30 }
 0x17f   :  { %v461_v11 = vmin.f32 %v126_v58, %v159_v8  ;;  %v470_v17 = vmin.f32 %v127_v10, %v160_v9 }
 0x181   :  { %v178_v16 = vrot.slane %v461_v11, 7  ;;  %v147_v18 = vpop.permute.xlu1 %146  ;;  %v135_v19 = vpop.permute.xlu0 %134  ;;  %v220_v20 = vrot.slane %v461_v11, 1  ;;  %v173_v32 = vrot.slane %v470_v17, 7  ;;  %v215_v47 = vrot.slane %v470_v17, 1 }
 0x182   :  { %v163_v21 = vsel %vm131_vm2, %v147_v18, 1e+30  ;;  %v157_v22 = vsel %vm131_vm2, %v135_v19, 1e+30 }
 0x183   :  { %v189_v24 = vsel %vm182_vm3, %v178_v16, %v172_v15  ;;  %v481_v25 = vmin.f32 %v130_v12, %v163_v21  ;;  %v165_v26 = vmin.f32 %v124_v13, %v157_v22  ;;  %v229_v38 = vsel %vm222_vm5, %v220_v20, %v214_v29 }
 0x184   :  { %v198_v30 = vsel %vm194_vm4, %v189_v24, 1e+30  ;;  %v238_v51 = vsel %vm234_vm6, %v229_v38, 1e+30 }
 0x185   :  { %v206_v31 = vmin.f32 %v164_v61, %v198_v30  ;;  %v179_v33 = vrot.slane %v481_v25, 7  ;;  %v174_v34 = vrot.slane %v165_v26, 7  ;;  %v137_v35 = vpop.permute.xlu1 %136  ;;  %v143_v36 = vpop.permute.xlu0 %142  ;;  %v216_v39 = vrot.slane %v165_v26, 1 }
 0x186   :  { %v158_v40 = vsel %vm131_vm2, %v137_v35, 1e+30  ;;  %v161_v45 = vsel %vm131_vm2, %v143_v36, 1e+30  ;;  %v221_v56 = vrot.slane %v481_v25, 1 }
 0x187   :  { %v190_v41 = vsel %vm182_vm3, %v179_v33, %v173_v32  ;;  %v187_v42 = vsel %vm182_vm3, %v172_v15, %v174_v34  ;;  %v166_v43 = vmin.f32 %v125_v27, %v158_v40  ;;  %v227_v49 = vsel %vm222_vm5, %v214_v29, %v216_v39 }
 0x188   :  { %v202_v48 = vsel %vm194_vm4, %v190_v41, 1e+30  ;;  %v243_v52 = vmin.f32 %v206_v31, %v227_v49  ;;  %v207_v58 = vmin.f32 %v165_v26, %v187_v42  ;;  %v169_v59 = vmin.f32 %v128_v37, %v161_v45 }
 0x189   :  { %v176_v53 = vrot.slane %v166_v43, 7  ;;  %v218_v54 = vrot.slane %v166_v43, 1  ;;  %v145_v55 = vpop.permute.xlu1 %144  ;;  %v210_v61 = vmin.f32 %v470_v17, %v202_v48 }
 0x18a   :  { %v162_v60 = vsel %vm131_vm2, %v145_v55, 1e+30  ;;  %v251_v62 = vsub.f32 %v359_v0, %v243_v52  ;;  %v175_v13 = vrot.slane %v169_v59, 7  ;;  %v217_v0 = vrot.slane %v169_v59, 1 }
 0x18b   :  { %v183_v63 = vsel %vm182_vm3, %v176_v53, %v178_v16  ;;  %v185_v8 = vsel %vm182_vm3, %v174_v34, %v176_v53  ;;  %v225_v12 = vsel %vm222_vm5, %v216_v39, %v218_v54  ;;  %v223_v44 = vsel %vm222_vm5, %v218_v54, %v220_v20 }
 0x18c   :  { %v208_v9 = vmin.f32 %v166_v43, %v185_v8  ;;  %v209_v10 = vmin.f32 %v461_v11, %v183_v63  ;;  %260 = vst.msk [vmem:[#allocation5] sm:$0xff] %vm259_vm7, %v251_v62  ;;  %v244_v14 = vmin.f32 %v207_v58, %v225_v12  ;;  %v170_v15 = vmin.f32 %v129_v46, %v162_v60 }
 0x18d   :  { %v230_v16 = vsel %vm222_vm5, %v221_v56, %v215_v47  ;;  %v188_v11 = vsel %vm182_vm3, %v173_v32, %v175_v13  ;;  %v228_v21 = vsel %vm222_vm5, %v215_v47, %v217_v0 }
 0x18e   :  { %v245_v17 = vmin.f32 %v208_v9, %v223_v44  ;;  %v246_v18 = vmin.f32 %v209_v10, %v238_v51  ;;  %v252_v19 = vsub.f32 %v375_v4, %v244_v14  ;;  %v177_v22 = vrot.slane %v170_v15, 7 }
 0x18f   :  { %v247_v24 = vmin.f32 %v210_v61, %v228_v21  ;;  %v219_v26 = vrot.slane %v170_v15, 1  ;;  %v211_v28 = vmin.f32 %v169_v59, %v188_v11  ;;  %v242_v30 = vsel %vm234_vm6, %v230_v16, 1e+30 }
 0x190   :  { %v253_v23 = vsub.f32 %v377_v5, %v245_v17  ;;  %v254_v20 = vsub.f32 %v367_v2, %v246_v18  ;;  %261 = vst.msk [vmem:[#allocation5 + $0x8] sm:$0xff] %vm259_vm7, %v252_v19  ;;  %v184_v27 = vsel %vm182_vm3, %v177_v22, %v179_v33  ;;  %v186_v4 = vsel %vm182_vm3, %v175_v13, %v177_v22 }
 0x191   :  { %v255_v29 = vsub.f32 %v361_v1, %v247_v24  ;;  %v212_v5 = vmin.f32 %v170_v15, %v186_v4  ;;  %v213_v2 = vmin.f32 %v481_v25, %v184_v27  ;;  %v224_v31 = vsel %vm222_vm5, %v219_v26, %v221_v56 }
 0x192   :  { %262 = vst.msk [vmem:[#allocation5 + $0x10] sm:$0xff] %vm259_vm7, %v253_v23  ;;  %263 = vst.msk [vmem:[#allocation5 + $0x18] sm:$0xff] %vm259_vm7, %v254_v20  ;;  %v226_v32 = vsel %vm222_vm5, %v217_v0, %v219_v26 }
 0x193   :  { %264 = vst.msk [vmem:[#allocation5 + $0x20] sm:$0xff] %vm259_vm7, %v255_v29  ;;  %v248_v33 = vmin.f32 %v211_v28, %v226_v32  ;;  %v249_v34 = vmin.f32 %v212_v5, %v224_v31  ;;  %v250_v35 = vmin.f32 %v213_v2, %v242_v30 }
 0x195   :  { %v256_v1 = vsub.f32 %v383_v6, %v248_v33  ;;  %v257_v25 = vsub.f32 %v385_v7, %v249_v34  ;;  %v258_v57 = vsub.f32 %v369_v3, %v250_v35 }
 0x197   :  { %265 = vst.msk [vmem:[#allocation5 + $0x28] sm:$0xff] %vm259_vm7, %v256_v1  ;;  %266 = vst.msk [vmem:[#allocation5 + $0x30] sm:$0xff] %vm259_vm7, %v257_v25 }
 0x198   :  { %267 = vst.msk [vmem:[#allocation5 + $0x38] sm:$0xff] %vm259_vm7, %v258_v57 }
 0x199   :  { %323 = shalt.err (!%p320_p9)
}
 0x19a   :  { %279 = dma.vmem_to_hbm [thread:$0]  %s274_s16, 1024, %s562_s1, [#allocation4], %s337_s9, %s337_s9, %s338_s10  }
 0x19b   :  { %334 = dma.done.wait [#allocation4], 1024  }
 0x19c   :  { %335 = vsyncadd [#allocation4], 4294966272 }
 0x19d   :  { %283 = vsyncpa [#allocation3], 1 }
 0x19e   :  { %284 = vsyncpa [#allocation4], 1 }

</bundles_post_ra>
